<compile_context>
chip_gen: v5e
topology: v5e:2x2
jax: 0.10.0
libtpu: 0.0.40
codegen_flags: <defaults>
</compile_context>

<pallas_src>
import functools
import math

import jax
import jax.numpy as jnp
from jax.experimental import pallas as pl
from jax.experimental.pallas import tpu as pltpu


# ----------------------------- pass 1: scores -> beta -----------------------------
def _score_kernel(h_ref, wbd_ref, b_ref, aproj_ref, beta_ref, acc_ref,
                  *, n_valid, n_pad):
    i = pl.program_id(0)

    @pl.when(i == 0)
    def _init():
        acc_ref[...] = jnp.zeros_like(acc_ref)

    # fc + tanh on the lane-dense (TN, M*d) tile: one MXU matmul, K = M*d.
    hw = jnp.tanh(
        jnp.dot(h_ref[...], wbd_ref[...], preferred_element_type=jnp.float32)
        + b_ref[...]
    )                                                   # (TN, M*d) f32

    acc_ref[...] += jnp.sum(hw, axis=0, keepdims=True)  # (1, M*d) running sum

    @pl.when(i == pl.num_programs(0) - 1)
    def _finalize():
        acc = acc_ref[...]
        pad = n_pad - n_valid
        if pad:
            # Padded h rows are zero, so each contributed exactly tanh(bias);
            # subtract their total instead of masking every tile.
            acc = acc - float(pad) * jnp.tanh(b_ref[...])
        s = acc * (1.0 / n_valid)                        # mean over N, (1, M*d)
        # per-metapath <., attn> dot as a matmul (no lane->sublane relayout)
        w = jnp.dot(s, aproj_ref[...],
                    preferred_element_type=jnp.float32)  # (1, M)
        # softmax over M on the lane axis (runs exactly once)
        w_max = jnp.max(w, axis=-1, keepdims=True)
        e = jnp.exp(w - w_max)
        denom = jnp.sum(e, axis=-1, keepdims=True)
        beta_ref[...] = (e / denom).astype(beta_ref.dtype)


# ----------------------------- pass 2: weighted sum -----------------------------
def _combine_kernel(h_ref, w_ref, o_ref):
    # z_grouped = h_grouped @ blockdiag_G(beta ⊗ I_d): the M-reduction as a
    # single MXU matmul with a >=128-lane output tile (unmasked stores).
    o_ref[...] = jnp.dot(h_ref[...], w_ref[...],
                         preferred_element_type=jnp.float32).astype(o_ref.dtype)


def _choose_tile_n(n, row_bytes, row_align, vmem_budget_bytes=8 << 20,
                   max_tile=2048):
    """Largest N-tile (multiple of row_align) whose double-buffered h slab fits."""
    tn = max(row_align, min(max_tile, vmem_budget_bytes // (2 * row_bytes)))
    tn = (tn // row_align) * row_align
    n_up = pl.cdiv(n, row_align) * row_align
    return min(tn, n_up)


def semantic_attention(h, fc_weight, fc_bias, attn, *,
                       tile_n=None,
                       compute_dtype=jnp.float32,
                       vmem_limit_bytes=32 * 1024 * 1024):
    """h: (N, M, d); fc_weight: (d, d) torch layout (out, in); fc_bias: (d,); attn: (1, d)."""
    N, M, d = h.shape
    md = M * d
    f32 = jnp.float32
    itemsize = jnp.dtype(compute_dtype).itemsize

    # Group G consecutive vertices per pass-2 output row so the store tile is
    # >= 128 lanes wide (unmasked vst).  Free: contiguous reshape of h / z.
    G = max(1, 128 // d)

    # ---- wrapper-side layout plumbing (tiny, one-time) ----
    h_flat = h.reshape(N, md).astype(compute_dtype)                    # (N, M*d)
    w_bd = jnp.kron(jnp.eye(M, dtype=f32),
                    fc_weight.T.astype(f32)).astype(compute_dtype)     # (M*d, M*d)
    b_tiled = jnp.tile(fc_bias.astype(f32), (M,)).reshape(1, md)       # (1, M*d) f32
    a_proj = jnp.kron(jnp.eye(M, dtype=f32),
                      attn.astype(f32).reshape(d, 1))                  # (M*d, M)

    # ---- tiling over N ----
    row_align = 8 * G                      # pass 1 needs %8, pass 2 needs %(8*G)
    if tile_n is None:
        tile_n = _choose_tile_n(N, md * itemsize, row_align)
    assert tile_n % row_align == 0, f"tile_n must be a multiple of {row_align}"
    n_pad = pl.cdiv(N, tile_n) * tile_n
    if n_pad != N:
        h_flat = jnp.pad(h_flat, ((0, n_pad - N), (0, 0)))             # zero rows
    grid_n = n_pad // tile_n

    # ---- pass 1: accumulate scores over N, finalize softmax -> beta (1, M) ----
    beta = pl.pallas_call(
        functools.partial(_score_kernel, n_valid=N, n_pad=n_pad),
        out_shape=jax.ShapeDtypeStruct((1, M), f32),
        grid_spec=pltpu.PrefetchScalarGridSpec(
            num_scalar_prefetch=0,
            grid=(grid_n,),
            in_specs=[
                pl.BlockSpec((tile_n, md), lambda i: (i, 0)),   # h tile (streamed)
                pl.BlockSpec((md, md), lambda i: (0, 0)),       # block-diag W^T
                pl.BlockSpec((1, md), lambda i: (0, 0)),        # tiled bias
                pl.BlockSpec((md, M), lambda i: (0, 0)),        # attn projection
            ],
            out_specs=pl.BlockSpec((1, M), lambda i: (0, 0)),
            scratch_shapes=[pltpu.VMEM((1, md), f32)],
        ),
        compiler_params=pltpu.CompilerParams(
            dimension_semantics=("arbitrary",),                 # reduction over N
            vmem_limit_bytes=vmem_limit_bytes,
        ),
        cost_estimate=pl.CostEstimate(
            flops=2 * n_pad * md * md,
            transcendentals=n_pad * md,
            bytes_accessed=n_pad * md * itemsize + (md * md + 2 * md) * 4,
        ),
    )(h_flat, w_bd, b_tiled, a_proj)

    # blockdiag_G(beta ⊗ I_d) -> (G*M*d, G*d); tiny wrapper op feeding pass 2
    b_kron = jnp.kron(beta.reshape(M, 1), jnp.eye(d, dtype=f32))        # (M*d, d)
    w2 = jnp.kron(jnp.eye(G, dtype=f32), b_kron).astype(compute_dtype)  # (G*M*d, G*d)

    # Group G vertices per row: free contiguous reshape of the padded slab.
    h_grp = h_flat.reshape(n_pad // G, G * md)

    # ---- pass 2: z = weighted sum over metapaths, pure streaming over N ----
    z_grp = pl.pallas_call(
        _combine_kernel,
        out_shape=jax.ShapeDtypeStruct((n_pad // G, G * d), f32),
        grid_spec=pltpu.PrefetchScalarGridSpec(
            num_scalar_prefetch=0,
            grid=(grid_n,),
            in_specs=[
                pl.BlockSpec((tile_n // G, G * md), lambda i: (i, 0)),
                pl.BlockSpec((G * md, G * d), lambda i: (0, 0)),
            ],
            out_specs=pl.BlockSpec((tile_n // G, G * d), lambda i: (i, 0)),
        ),
        compiler_params=pltpu.CompilerParams(
            dimension_semantics=("parallel",),                  # megacore-splittable
            vmem_limit_bytes=vmem_limit_bytes,
        ),
        cost_estimate=pl.CostEstimate(
            flops=2 * (n_pad // G) * (G * md) * (G * d),
            transcendentals=0,
            bytes_accessed=(n_pad * md * itemsize + n_pad * d * 4
                            + (G * md) * (G * d) * itemsize),
        ),
    )(h_grp, w2)

    return z_grp.reshape(n_pad, d)[:N]


def _reference(h, fc_weight, fc_bias, attn):
    hw = jnp.tanh(jnp.einsum("nmd,ed->nme", h, fc_weight) + fc_bias)
    w = jnp.mean(hw, axis=0) @ attn.T            # (M, 1)
    beta = jax.nn.softmax(w, axis=0)             # (M, 1)
    return jnp.sum(h * beta[None, :, :], axis=1)


if __name__ == "__main__":
    # Small shapes: N vertices, M metapaths, hidden dim d (M*d = 128 -> lane-dense)
    N, M, d = 200, 4, 32
    key = jax.random.PRNGKey(0)
    k_h, k_w, k_b, k_a = jax.random.split(key, 4)

    # Deterministic parameter init mirroring the module's reset_parameters():
    # xavier_normal_ with gain = calculate_gain('relu') = sqrt(2)
    gain = math.sqrt(2.0)
    std_fc = gain * math.sqrt(2.0 / (d + d))
    std_attn = gain * math.sqrt(2.0 / (1 + d))
    fc_weight = std_fc * jax.random.normal(k_w, (d, d), jnp.float32)   # (out, in)
    fc_bias = (1.0 / math.sqrt(d)) * (
        2.0 * jax.random.uniform(k_b, (d,), jnp.float32) - 1.0
    )
    attn = std_attn * jax.random.normal(k_a, (1, d), jnp.float32)

    h = jax.random.normal(k_h, (N, M, d), jnp.float32)

    z_ref = _reference(h, fc_weight, fc_bias, attn)

    # Small tile -> exercises multi-step accumulation, pl.when init/finalize,
    # padded-row bias correction (N=200 padded to 256).
    z_tiled = jax.block_until_ready(
        semantic_attention(h, fc_weight, fc_bias, attn, tile_n=64))
    # Auto-chosen (large) tile -> single-step path.
    z_auto = jax.block_until_ready(
        semantic_attention(h, fc_weight, fc_bias, attn))

    assert z_tiled.shape == (N, d)
    assert jnp.allclose(z_tiled, z_ref, atol=1e-5, rtol=1e-5), "tiled mismatch"
    assert jnp.allclose(z_auto, z_ref, atol=1e-5, rtol=1e-5), "auto-tile mismatch"

    print("KERNEL_OK")
</pallas_src>

<mosaic_0001>
module attributes {stable_mosaic.version = 11 : i64} {
  func.func @_score_kernel(%arg0: i32, %arg1: memref<64x128xf32, #tpu.memory_space<vmem>>, %arg2: memref<128x128xf32, #tpu.memory_space<vmem>>, %arg3: memref<1x128xf32, #tpu.memory_space<vmem>>, %arg4: memref<128x4xf32, #tpu.memory_space<vmem>>, %arg5: memref<1x4xf32, #tpu.memory_space<vmem>>, %arg6: memref<1x128xf32, #tpu.memory_space<vmem>>) attributes {dimension_semantics = [#tpu.dimension_semantics<arbitrary>], iteration_bounds = array<i64: 4>, scalar_prefetch = 0 : i64, scratch_operands = 1 : i64, tpu.core_type = #tpu.core_type<tc>, window_params = [{transform_indices = @transform_0, window_bounds = array<i64: 64, 128>}, {pipeline_mode = #tpu.pipeline_mode<synchronous>, transform_indices = @transform_1, window_bounds = array<i64: 128, 128>}, {pipeline_mode = #tpu.pipeline_mode<synchronous>, transform_indices = @transform_2, window_bounds = array<i64: 1, 128>}, {pipeline_mode = #tpu.pipeline_mode<synchronous>, transform_indices = @transform_3, window_bounds = array<i64: 128, 4>}, {pipeline_mode = #tpu.pipeline_mode<synchronous>, transform_indices = @transform_4, window_bounds = array<i64: 1, 4>}]} {
    %c0_i32 = arith.constant 0 : i32
    %0 = arith.cmpi eq, %arg0, %c0_i32 : i32
    %1 = arith.extui %0 : i1 to i32
    %c0_i32_0 = arith.constant 0 : i32
    %2 = arith.cmpi ne, %1, %c0_i32_0 : i32
    scf.if %2 {
      %cst_12 = arith.constant 0.000000e+00 : f32
      %18 = vector.broadcast %cst_12 : f32 to vector<1x128xf32>
      %c0_13 = arith.constant 0 : index
      %c0_14 = arith.constant 0 : index
      %19 = vector.load %arg6[%c0_13, %c0_14] : memref<1x128xf32, #tpu.memory_space<vmem>>, vector<1x128xf32>
      tpu.vector_store %arg6[%c0_13, %c0_14], %18 {strides = array<i32>} : memref<1x128xf32, #tpu.memory_space<vmem>>, vector<1x128xf32>,
    } else {
    }
    %c0 = arith.constant 0 : index
    %c0_1 = arith.constant 0 : index
    %3 = vector.load %arg1[%c0, %c0_1] : memref<64x128xf32, #tpu.memory_space<vmem>>, vector<64x128xf32>
    %c0_2 = arith.constant 0 : index
    %c0_3 = arith.constant 0 : index
    %4 = vector.load %arg2[%c0_2, %c0_3] : memref<128x128xf32, #tpu.memory_space<vmem>>, vector<128x128xf32>
    %cst = arith.constant dense<0.000000e+00> : vector<64x128xf32>
    %5 = tpu.matmul %3, %4, %cst {dimension_numbers = #tpu.dot_dimension_numbers<[1], [0], [0], [1], [0, 0, 1, 1], [], []>} : vector<64x128xf32>, vector<128x128xf32>, vector<64x128xf32> -> vector<64x128xf32>
    %c0_4 = arith.constant 0 : index
    %c0_5 = arith.constant 0 : index
    %6 = vector.load %arg3[%c0_4, %c0_5] : memref<1x128xf32, #tpu.memory_space<vmem>>, vector<1x128xf32>
    %7 = vector.broadcast %6 : vector<1x128xf32> to vector<64x128xf32>
    %8 = arith.addf %5, %7 : vector<64x128xf32>
    %9 = math.tanh %8 : vector<64x128xf32>
    %c0_6 = arith.constant 0 : index
    %c0_7 = arith.constant 0 : index
    %10 = vector.load %arg6[%c0_6, %c0_7] : memref<1x128xf32, #tpu.memory_space<vmem>>, vector<1x128xf32>
    %cst_8 = arith.constant dense<0.000000e+00> : vector<128xf32>
    %11 = vector.multi_reduction <add>, %9, %cst_8 [0] : vector<64x128xf32> to vector<128xf32>
    %12 = vector.shape_cast %11 : vector<128xf32> to vector<1x128xf32>
    %13 = arith.addf %10, %12 : vector<1x128xf32>
    %c0_9 = arith.constant 0 : index
    %c0_10 = arith.constant 0 : index
    %14 = vector.load %arg6[%c0_9, %c0_10] : memref<1x128xf32, #tpu.memory_space<vmem>>, vector<1x128xf32>
    tpu.vector_store %arg6[%c0_9, %c0_10], %13 {strides = array<i32>} : memref<1x128xf32, #tpu.memory_space<vmem>>, vector<1x128xf32>,
    %c3_i32 = arith.constant 3 : i32
    %15 = arith.cmpi eq, %arg0, %c3_i32 : i32
    %16 = arith.extui %15 : i1 to i32
    %c0_i32_11 = arith.constant 0 : i32
    %17 = arith.cmpi ne, %16, %c0_i32_11 : i32
    scf.if %17 {
      %c0_12 = arith.constant 0 : index
      %c0_13 = arith.constant 0 : index
      %18 = vector.load %arg6[%c0_12, %c0_13] : memref<1x128xf32, #tpu.memory_space<vmem>>, vector<1x128xf32>
      %c0_14 = arith.constant 0 : index
      %c0_15 = arith.constant 0 : index
      %19 = vector.load %arg3[%c0_14, %c0_15] : memref<1x128xf32, #tpu.memory_space<vmem>>, vector<1x128xf32>
      %20 = math.tanh %19 : vector<1x128xf32>
      %cst_16 = arith.constant 5.600000e+01 : f32
      %21 = vector.broadcast %cst_16 : f32 to vector<1x128xf32>
      %22 = arith.mulf %21, %20 : vector<1x128xf32>
      %23 = arith.subf %18, %22 : vector<1x128xf32>
      %cst_17 = arith.constant 5.000000e-03 : f32
      %24 = vector.broadcast %cst_17 : f32 to vector<1x128xf32>
      %25 = arith.mulf %23, %24 : vector<1x128xf32>
      %c0_18 = arith.constant 0 : index
      %c0_19 = arith.constant 0 : index
      %26 = vector.load %arg4[%c0_18, %c0_19] : memref<128x4xf32, #tpu.memory_space<vmem>>, vector<128x4xf32>
      %cst_20 = arith.constant dense<0.000000e+00> : vector<1x4xf32>
      %27 = tpu.matmul %25, %26, %cst_20 {dimension_numbers = #tpu.dot_dimension_numbers<[1], [0], [0], [1], [0, 0, 1, 1], [], []>} : vector<1x128xf32>, vector<128x4xf32>, vector<1x4xf32> -> vector<1x4xf32>
      %cst_21 = arith.constant dense<0xFF800000> : vector<1xf32>
      %28 = vector.multi_reduction <maximumf>, %27, %cst_21 [1] : vector<1x4xf32> to vector<1xf32>
      %29 = vector.shape_cast %28 : vector<1xf32> to vector<1x1xf32>
      %30 = vector.broadcast %29 : vector<1x1xf32> to vector<1x4xf32>
      %31 = arith.subf %27, %30 : vector<1x4xf32>
      %32 = math.exp %31 : vector<1x4xf32>
      %cst_22 = arith.constant dense<0.000000e+00> : vector<1xf32>
      %33 = vector.multi_reduction <add>, %32, %cst_22 [1] : vector<1x4xf32> to vector<1xf32>
      %34 = vector.shape_cast %33 : vector<1xf32> to vector<1x1xf32>
      %35 = vector.broadcast %34 : vector<1x1xf32> to vector<1x4xf32>
      %36 = arith.divf %32, %35 : vector<1x4xf32>
      %c0_23 = arith.constant 0 : index
      %c0_24 = arith.constant 0 : index
      %37 = vector.load %arg5[%c0_23, %c0_24] : memref<1x4xf32, #tpu.memory_space<vmem>>, vector<1x4xf32>
      tpu.vector_store %arg5[%c0_23, %c0_24], %36 {strides = array<i32>} : memref<1x4xf32, #tpu.memory_space<vmem>>, vector<1x4xf32>,
    } else {
    }
    return
  }
  func.func @transform_0(%arg0: i32) -> (i32, i32) {
    %c0_i32 = arith.constant 0 : i32
    %c0_i32_0 = arith.constant 0 : i32
    return %arg0, %c0_i32 : i32, i32
  }
  func.func @transform_1(%arg0: i32) -> (i32, i32) {
    %c0_i32 = arith.constant 0 : i32
    %c0_i32_0 = arith.constant 0 : i32
    %c0_i32_1 = arith.constant 0 : i32
    return %c0_i32, %c0_i32_0 : i32, i32
  }
  func.func @transform_2(%arg0: i32) -> (i32, i32) {
    %c0_i32 = arith.constant 0 : i32
    %c0_i32_0 = arith.constant 0 : i32
    %c0_i32_1 = arith.constant 0 : i32
    return %c0_i32, %c0_i32_0 : i32, i32
  }
  func.func @transform_3(%arg0: i32) -> (i32, i32) {
    %c0_i32 = arith.constant 0 : i32
    %c0_i32_0 = arith.constant 0 : i32
    %c0_i32_1 = arith.constant 0 : i32
    return %c0_i32, %c0_i32_0 : i32, i32
  }
  func.func @transform_4(%arg0: i32) -> (i32, i32) {
    %c0_i32 = arith.constant 0 : i32
    %c0_i32_0 = arith.constant 0 : i32
    %c0_i32_1 = arith.constant 0 : i32
    return %c0_i32, %c0_i32_0 : i32, i32
  }
}

</mosaic_0001>

<bundles_post_ra>
// kernel: tpu_custom_call.1
= control target key start
LH: loop header
LB: loop body
LE: loop exit
PB: predicated region body
PF: predicated region fallthrough
CT: control target
= control target key end

     0   :  { %9 = vsyncpa [#allocation4], 0  ;;  %s906_s0 = inlined_call_operand.hbm [shape: f32[256,128], index: 0, kind: input, shape index: {}]   ;;  %s907_s1 = inlined_call_operand.vmem [shape: f32[128,128], index: 1, kind: input, shape index: {}]   ;;  %s908_s2 = inlined_call_operand.vmem [shape: f32[1,128], index: 2, kind: input, shape index: {}]   ;;  %s909_s3 = inlined_call_operand.vmem [shape: f32[128,4], index: 3, kind: input, shape index: {}]   ;;  %s910_s4 = inlined_call_operand.hbm [shape: f32[1,4], index: 4, kind: output, shape index: {}]  }
   0x1   :  { %11 = vsyncpa [#allocation4 + $0x1], 0 }
   0x2   :  { %12 = vsyncpa [#allocation5], 0  ;;  %s698_s15 = smov 0   ;;  %s700_s16 = smov 0  }
   0x3   :  { %s702_s17 = smov 0   ;;  %s704_s18 = smov 0  }
   0x4 LB: > { %s717_s19 = sadd.s32 4294967295, %s667_s18   ;;  %s720_s20 = sadd.s32 1, %s667_s18   ;;  %s667_s18 = sphi %s704_s18, %s917_s18   ;;  %s663_s17 = sphi %s702_s17, %s916_s17   ;;  %s659_s16 = sphi %s700_s16, %s915_s16   ;;  %s655_s15 = sphi %s698_s15, %s914_s15  }
   0x5   : > { %s22_s21 = ssub.s32 %s667_s18, %s720_s20  ;;  %s25_s22 = sadd.s32 1, %s663_s17 }
   0x6   : > { %p23_p0 = scmp.eq.s32.totalorder %s22_s21, 0  ;;  %p32_p1 = scmp.ne.s32.totalorder %s663_s17, %s659_s16 }
   0x7   : > { %p33_p2 = scmp.eq.s32.totalorder %s667_s18, 0  ;;  %p38_p3 = scmp.ne.s32.totalorder %s659_s16, %s655_s15 }
   0x8   : > { %s730_s23 = scalar_select %p23_p0, %s663_s17, %s25_s22  }
   0x9   : > { %p732_p4 = por %p33_p2, %p32_p1  ;;  %p39_p5 = scmp.eq.s32.totalorder %s717_s19, 0 }
   0xa   : > { %p509_p6 = scmp.lt.s32.totalorder %s667_s18, 4  ;;  %s155_s26 = sand.u32 1, %s663_s17  }
   0xb   : > { %p738_p7 = por %p39_p5, %p38_p3  ;;  %s439_s27 = sshll.u32 %s155_s26, 6 }
   0xc   : > { %s450_s28 = sshll.u32 %s667_s18, 6  ;;  %s159_s6 = scalar_lea.vmem [#allocation3], %s439_s27 }
   0xd   : > { %s164_s5 = scalar_lea.hbm %s906_s0, %s450_s28  ;;  %s167_s7 = sshll.u32 %s159_s6, 4  ;;  %s168_s7 = int_to_ptr.vmem [resolvable:$true] %s167_s7 }
   0xe   : > { %s165_s8 = sshll.u32 %s164_s5, 4  ;;  %p749_p8 = pnand %p509_p6, %p732_p4  ;;  %s166_s8 = int_to_ptr.hbm [resolvable:$true] %s165_s8 }
   0xf   : > { %p442_p9 = scmp.ge.s32.totalorder %s667_s18, 1  ;;  %s156_s10 = scalar_lea.sflag [#allocation4], %s155_s26 }
  0x10   : > { %s571_s11 = sshra.s32 %s166_s8, 4  ;;  %p575_p11 = pneg %p749_p8  ;;  %s572_s11 = int_to_ptr.hbm [resolvable:$true] %s571_s11 }
  0x11   : > { %s573_s12 = scalar_lea.hbm %s572_s11, 64  ;;  %s578_s15 = scalar_lea.hbm %s906_s0, 256 }
  0x12   : > { %p574_p10 = scmp.ne.s32.totalorder %s572_s11, %s573_s12  ;;  %p579_p0 = scmp.lt.s32.totalorder %s572_s11, %s906_s0 }
  0x13   : > { %p580_p1 = scmp.lt.s32.totalorder %s578_s15, %s573_s12 }
  0x14   : > { %p576_p12 = pnand %p575_p11, %p574_p10 }
  0x15   : > { %p581_p2 = por %p580_p1, %p579_p0 }
  0x16   : > { %p577_p13 = pneg %p576_p12 }
  0x18   : > { %p582_p3 = pnand %p581_p2, %p577_p13 }
  0x1a   : > { %585 = shalt.err (!%p582_p3)
}
  0x1b   : > { %s669_s24 = smov 128   ;;  %s670_s26 = smov 8  }
  0x1c   : > { %508 = dma.hbm_to_vmem [thread:$0]  (!%p749_p8), %s166_s8, 1024, %s168_s7, %s156_s10, %s669_s24, %s669_s24, %s670_s26  }
  0x1d   : > { %p175_p4 = scmp.lt.s32.totalorder %s667_s18, 5 }
  0x1f   : > { %p176_p5 = pnand %p442_p9, %p175_p4 }
  0x20   : > { %s181_s27 = sand.u32 (!%p176_p5), 1, %s659_s16  }
  0x21   : > { %179 = sbr.rel (%p176_p5) target bundleno = 680 (0x2a8), region = 36  ;;  %s443_s28 = sshll.u32 (!%p176_p5), %s181_s27, 6 }
  0x22   : > { %s182_s29 = scalar_lea.sflag (!%p176_p5), [#allocation4], %s181_s27  ;;  %s768_s30 = scalar_lea.vmem (!%p176_p5), [#allocation3], %s443_s28 }
  0x26   : > { %646 = dma.done.wait (%p738_p7), %s182_s29, 1024  }
  0x27   : > { %648 = vsyncadd (%p738_p7), %s182_s29, 4294966272  ;;  %p444_p6 = scmp.ne.s32.totalorder %s717_s19, 0 }
  0x29   : > { %210 = sbr.rel (%p444_p6) target bundleno = 48 (0x30), region = 44 }
  0x2e   : > { %v671_v0 = vmov 0.0  }
  0x2f   : > { %211 = vst [vmem:[#allocation2] sm:$0x1] %v671_v0 }
  0x30 PF: > { %v235_v1 = vld [vmem:[%s907_s1 + $0x78] sm:$0xff]  ;;  %v234_v2 = vld [vmem:[%s907_s1 + $0x70] sm:$0xff]  ;;  %v233_v3 = vld [vmem:[%s907_s1 + $0x68] sm:$0xff]  ;;  %p445_p7 = scmp.ne.s32.totalorder %s717_s19, 3 }
  0x31   : > { %240 = vmatpush.msra.mxu0 %v235_v1  ;;  %452 = vmatpush.msra.mxu2 %v235_v1  ;;  %v232_v4 = vld [vmem:[%s907_s1 + $0x60] sm:$0xff]  ;;  %v231_v5 = vld [vmem:[%s907_s1 + $0x58] sm:$0xff]  ;;  %v230_v6 = vld [vmem:[%s907_s1 + $0x50] sm:$0xff] }
  0x32   : > { %451 = vmatpush.msra.mxu1 %v235_v1  ;;  %453 = vmatpush.msra.mxu3 %v235_v1  ;;  %v229_v7 = vld [vmem:[%s907_s1 + $0x48] sm:$0xff]  ;;  %v228_v8 = vld [vmem:[%s907_s1 + $0x40] sm:$0xff]  ;;  %v227_v9 = vld [vmem:[%s907_s1 + $0x38] sm:$0xff] }
  0x33   : > { %241 = vmatpush.msra.mxu0 %v234_v2  ;;  %455 = vmatpush.msra.mxu2 %v234_v2  ;;  %v226_v10 = vld [vmem:[%s907_s1 + $0x30] sm:$0xff]  ;;  %v225_v11 = vld [vmem:[%s907_s1 + $0x28] sm:$0xff]  ;;  %v224_v12 = vld [vmem:[%s907_s1 + $0x20] sm:$0xff] }
  0x34   : > { %454 = vmatpush.msra.mxu1 %v234_v2  ;;  %456 = vmatpush.msra.mxu3 %v234_v2  ;;  %v223_v13 = vld [vmem:[%s907_s1 + $0x18] sm:$0xff]  ;;  %v222_v14 = vld [vmem:[%s907_s1 + $0x10] sm:$0xff]  ;;  %v221_v15 = vld [vmem:[%s907_s1 + $0x8] sm:$0xff] }
  0x35   : > { %242 = vmatpush.msra.mxu0 %v233_v3  ;;  %458 = vmatpush.msra.mxu2 %v233_v3  ;;  %v220_v16 = vld [vmem:[%s907_s1] sm:$0xff]  ;;  %v214_v19 = vld [vmem:[%s768_s30 + $0x10] sm:$0xff]  ;;  %v213_v21 = vld [vmem:[%s768_s30 + $0x8] sm:$0xff] }
  0x36   : > { %457 = vmatpush.msra.mxu1 %v233_v3  ;;  %459 = vmatpush.msra.mxu3 %v233_v3  ;;  %v212_v17 = vld [vmem:[%s768_s30] sm:$0xff]  ;;  %v218_v20 = vld [vmem:[%s768_s30 + $0x30] sm:$0xff]  ;;  %v217_v22 = vld [vmem:[%s768_s30 + $0x28] sm:$0xff] }
  0x37   : > { %243 = vmatpush.msra.mxu0 %v232_v4  ;;  %461 = vmatpush.msra.mxu2 %v232_v4  ;;  %v216_v18 = vld [vmem:[%s768_s30 + $0x20] sm:$0xff]  ;;  %v215_v23 = vld [vmem:[%s768_s30 + $0x18] sm:$0xff] }
  0x38   : > { %460 = vmatpush.msra.mxu1 %v232_v4  ;;  %462 = vmatpush.msra.mxu3 %v232_v4  ;;  %v219_v24 = vld [vmem:[%s768_s30 + $0x38] sm:$0xff] }
  0x39   : > { %244 = vmatpush.msra.mxu0 %v231_v5  ;;  %464 = vmatpush.msra.mxu2 %v231_v5  ;;  %v548_v26 = vld [vmem:[%s908_s2] ss:$0 sm:$0xff] }
  0x3a   : > { %463 = vmatpush.msra.mxu1 %v231_v5  ;;  %465 = vmatpush.msra.mxu3 %v231_v5  ;;  %v289_v62 = vld [vmem:[#allocation2] sm:$0x1] }
  0x3b   : > { %245 = vmatpush.msra.mxu0 %v230_v6  ;;  %467 = vmatpush.msra.mxu2 %v230_v6 }
  0x3c   : > { %466 = vmatpush.msra.mxu1 %v230_v6  ;;  %468 = vmatpush.msra.mxu3 %v230_v6 }
  0x3d   : > { %246 = vmatpush.msra.mxu0 %v229_v7  ;;  %470 = vmatpush.msra.mxu2 %v229_v7 }
  0x3e   : > { %469 = vmatpush.msra.mxu1 %v229_v7  ;;  %471 = vmatpush.msra.mxu3 %v229_v7 }
  0x3f   : > { %247 = vmatpush.msra.mxu0 %v228_v8  ;;  %473 = vmatpush.msra.mxu2 %v228_v8 }
  0x40   : > { %472 = vmatpush.msra.mxu1 %v228_v8  ;;  %474 = vmatpush.msra.mxu3 %v228_v8 }
  0x41   : > { %248 = vmatpush.msra.mxu0 %v227_v9  ;;  %476 = vmatpush.msra.mxu2 %v227_v9 }
  0x42   : > { %475 = vmatpush.msra.mxu1 %v227_v9  ;;  %477 = vmatpush.msra.mxu3 %v227_v9 }
  0x43   : > { %249 = vmatpush.msra.mxu0 %v226_v10  ;;  %479 = vmatpush.msra.mxu2 %v226_v10 }
  0x44   : > { %478 = vmatpush.msra.mxu1 %v226_v10  ;;  %480 = vmatpush.msra.mxu3 %v226_v10 }
  0x45   : > { %250 = vmatpush.msra.mxu0 %v225_v11  ;;  %482 = vmatpush.msra.mxu2 %v225_v11 }
  0x46   : > { %481 = vmatpush.msra.mxu1 %v225_v11  ;;  %483 = vmatpush.msra.mxu3 %v225_v11 }
  0x47   : > { %251 = vmatpush.msra.mxu0 %v224_v12  ;;  %485 = vmatpush.msra.mxu2 %v224_v12 }
  0x48   : > { %484 = vmatpush.msra.mxu1 %v224_v12  ;;  %486 = vmatpush.msra.mxu3 %v224_v12 }
  0x49   : > { %252 = vmatpush.msra.mxu0 %v223_v13  ;;  %488 = vmatpush.msra.mxu2 %v223_v13 }
  0x4a   : > { %487 = vmatpush.msra.mxu1 %v223_v13  ;;  %489 = vmatpush.msra.mxu3 %v223_v13 }
  0x4b   : > { %253 = vmatpush.msra.mxu0 %v222_v14  ;;  %491 = vmatpush.msra.mxu2 %v222_v14 }
  0x4c   : > { %490 = vmatpush.msra.mxu1 %v222_v14  ;;  %492 = vmatpush.msra.mxu3 %v222_v14 }
  0x4d   : > { %254 = vmatpush.msra.mxu0 %v221_v15  ;;  %494 = vmatpush.msra.mxu2 %v221_v15 }
  0x4e   : > { %493 = vmatpush.msra.mxu1 %v221_v15  ;;  %495 = vmatpush.msra.mxu3 %v221_v15 }
  0x4f   : > { %255 = vmatpush.msra.mxu0 %v220_v16  ;;  %497 = vmatpush.msra.mxu2 %v220_v16 }
  0x50   : > { %256 = vmatmul.f32.vlgmr.msra.gmra.mxu0 %v212_v17  ;;  %268 = vmatmul.f32.vlgmr.msra.gmra.mxu2 %v216_v18 }
  0x51   : > { %496 = vmatpush.msra.mxu1 %v220_v16  ;;  %498 = vmatpush.msra.mxu3 %v220_v16 }
  0x52   : > { %262 = vmatmul.f32.vlgmr.msra.gmra.mxu1 %v214_v19  ;;  %274 = vmatmul.f32.vlgmr.msra.gmra.mxu3 %v218_v20 }
  0x58   : > { %259 = vmatmul.f32.gmra.mxu0 %v213_v21  ;;  %271 = vmatmul.f32.gmra.mxu2 %v217_v22 }
  0x5a   : > { %265 = vmatmul.f32.gmra.mxu1 %v215_v23  ;;  %277 = vmatmul.f32.gmra.mxu3 %v219_v24 }
  0xcd   : > { %v257_v25 = vpop.f32.mrf.mxu0 }
  0xce   : > { %v258_v28 = vadd.f32 %v548_v26, %v257_v25 }
  0xcf   : > { %v263_v27 = vpop.f32.mrf.mxu1 }
  0xd0   : > { %v264_v30 = vadd.f32 %v548_v26, %v263_v27  ;;  %549 = vtanh.f32 %v258_v28 }
  0xd3   : > { %v269_v29 = vpop.f32.mrf.mxu2 }
  0xd4   : > { %v270_v36 = vadd.f32 %v548_v26, %v269_v29 }
  0xd5   : > { %v260_v31 = vpop.f32.mrf.mxu0  ;;  %v275_v32 = vpop.f32.mrf.mxu3 }
  0xd6   : > { %v261_v33 = vadd.f32 %v548_v26, %v260_v31  ;;  %v550_v39 = vpop.eup %549  ;;  %v276_v40 = vadd.f32 %v548_v26, %v275_v32 }
  0xd7   : > { %v266_v34 = vpop.f32.mrf.mxu1 }
  0xd8   : > { %551 = vtanh.f32 %v261_v33  ;;  %v267_v35 = vadd.f32 %v548_v26, %v266_v34 }
  0xd9   : > { %553 = vtanh.f32 %v264_v30 }
  0xda   : > { %555 = vtanh.f32 %v267_v35 }
  0xdb   : > { %v272_v37 = vpop.f32.mrf.mxu2  ;;  %557 = vtanh.f32 %v270_v36 }
  0xdc   : > { %v273_v38 = vadd.f32 %v548_v26, %v272_v37 }
  0xdd   : > { %v278_v41 = vpop.f32.mrf.mxu3 }
  0xde   : > { %v552_v42 = vpop.eup %551  ;;  %559 = vtanh.f32 %v273_v38  ;;  %v279_v43 = vadd.f32 %v548_v26, %v278_v41 }
  0xdf   : > { %v554_v44 = vpop.eup %553  ;;  %v290_v45 = vadd.f32 %v552_v42, %v550_v39  ;;  %561 = vtanh.f32 %v276_v40 }
  0xe0   : > { %v556_v46 = vpop.eup %555  ;;  %563 = vtanh.f32 %v279_v43 }
  0xe1   : > { %v291_v47 = vadd.f32 %v554_v44, %v290_v45  ;;  %v558_v48 = vpop.eup %557 }
  0xe3   : > { %v292_v49 = vadd.f32 %v556_v46, %v291_v47 }
  0xe4   : > { %v560_v50 = vpop.eup %559 }
  0xe5   : > { %v293_v51 = vadd.f32 %v558_v48, %v292_v49  ;;  %v562_v52 = vpop.eup %561 }
  0xe6   : > { %v564_v54 = vpop.eup %563 }
  0xe7   : > { %v294_v53 = vadd.f32 %v560_v50, %v293_v51 }
  0xe9   : > { %v295_v55 = vadd.f32 %v562_v52, %v294_v53 }
  0xeb   : > { %v296_v56 = vadd.f32 %v564_v54, %v295_v55 }
  0xed   : > { %v297_v57 = vrot.slane %v296_v56, 4 }
  0xef   : > { %v298_v58 = vadd.f32 %v297_v57, %v296_v56 }
  0xf1   : > { %v299_v59 = vrot.slane %v298_v58, 2 }
  0xf3   : > { %v300_v60 = vadd.f32 %v299_v59, %v298_v58 }
  0xf5   : > { %v301_v61 = vrot.slane %v300_v60, 1 }
  0xf7   : > { %v302_v63 = vadd.f32 %v301_v61, %v300_v60  ;;  %308 = sbr.rel (%p445_p7) target bundleno = 675 (0x2a3), region = 48 }
  0xf9   : > { %v303_v0 = vadd.f32 %v302_v63, %v289_v62 }
  0xfb   : > { %304 = vst [vmem:[#allocation2] sm:$0x1] %v303_v0 }
  0xfc   : > { %v330_v1 = vld [vmem:[%s909_s3 + $0x78] sm:$0xff]  ;;  %v329_v2 = vld [vmem:[%s909_s3 + $0x70] sm:$0xff]  ;;  %v328_v3 = vld [vmem:[%s909_s3 + $0x68] sm:$0xff]  ;;  %vm351_vm0 = vcmask 24576  }
  0xfd   : > { %331 = vmatpush.msra.mxu0 %v330_v1  ;;  %v327_v4 = vld [vmem:[%s909_s3 + $0x60] sm:$0xff]  ;;  %v326_v5 = vld [vmem:[%s909_s3 + $0x58] sm:$0xff]  ;;  %v325_v6 = vld [vmem:[%s909_s3 + $0x50] sm:$0xff] }
  0xfe   : > { %v310_v7 = vld [vmem:[%s908_s2] sm:$0x1]  ;;  %v324_v8 = vld [vmem:[%s909_s3 + $0x48] sm:$0xff]  ;;  %v322_v10 = vld [vmem:[%s909_s3 + $0x38] sm:$0xff] }
  0xff   : > { %332 = vmatpush.msra.mxu0 %v329_v2  ;;  %565 = vtanh.f32 %v310_v7  ;;  %v323_v9 = vld [vmem:[%s909_s3 + $0x40] sm:$0xff]  ;;  %v321_v11 = vld [vmem:[%s909_s3 + $0x30] sm:$0xff]  ;;  %v320_v13 = vld [vmem:[%s909_s3 + $0x28] sm:$0xff] }
 0x100   : > { %v319_v14 = vld [vmem:[%s909_s3 + $0x20] sm:$0xff]  ;;  %v318_v17 = vld [vmem:[%s909_s3 + $0x18] sm:$0xff]  ;;  %v317_v18 = vld [vmem:[%s909_s3 + $0x10] sm:$0xff] }
 0x101   : > { %333 = vmatpush.msra.mxu0 %v328_v3  ;;  %v316_v20 = vld [vmem:[%s909_s3 + $0x8] sm:$0xff]  ;;  %v315_v21 = vld [vmem:[%s909_s3] sm:$0xff] }
 0x102   : > { %v309_v16 = vld [vmem:[#allocation2] sm:$0x1] }
 0x103   : > { %334 = vmatpush.msra.mxu0 %v327_v4 }
 0x105   : > { %335 = vmatpush.msra.mxu0 %v326_v5  ;;  %v566_v12 = vpop.eup %565 }
 0x106   : > { %v312_v15 = vmul.f32 56.0, %v566_v12 }
 0x107   : > { %336 = vmatpush.msra.mxu0 %v325_v6 }
 0x108   : > { %v313_v19 = vsub.f32 %v309_v16, %v312_v15 }
 0x109   : > { %337 = vmatpush.msra.mxu0 %v324_v8 }
 0x10a   : > { %v314_v22 = vmul.f32 0.005, %v313_v19 }
 0x10b   : > { %338 = vmatpush.msra.mxu0 %v323_v9 }
 0x10d   : > { %339 = vmatpush.msra.mxu0 %v322_v10 }
 0x10f   : > { %340 = vmatpush.msra.mxu0 %v321_v11 }
 0x111   : > { %341 = vmatpush.msra.mxu0 %v320_v13 }
 0x113   : > { %342 = vmatpush.msra.mxu0 %v319_v14 }
 0x115   : > { %343 = vmatpush.msra.mxu0 %v318_v17 }
 0x117   : > { %344 = vmatpush.msra.mxu0 %v317_v18 }
 0x119   : > { %345 = vmatpush.msra.mxu0 %v316_v20 }
 0x11b   : > { %346 = vmatpush.msra.mxu0 %v315_v21 }
 0x11c   : > { %347 = vmatmul.f32.vlgmr.msra.gmra.mxu0 %v314_v22 }
 0x199   : > { %v348_v23 = vpop.f32.mrf.mxu0 }
 0x19a   : > { %v352_v24 = vsel %vm351_vm0, %v348_v23, -inf }
 0x19b   : > { %353 = vmax.xlane.f32.xlu0 %v352_v24 }
 0x20e   : > { %v354_v25 = vpop.xlane.xlu0 %353 }
 0x20f   : > { %v355_v26 = vsub.f32 %v348_v23, %v354_v25 }
 0x211   : > { %v356_v27 = vmul.f32 1.442695, %v355_v26 }
 0x213   : > { %567 = vpow2.f32 %v356_v27 }
 0x219   : > { %v568_v28 = vpop.eup %567 }
 0x21a   : > { %v358_v29 = vsel %vm351_vm0, %v568_v28, 0.0 }
 0x21b   : > { %359 = vadd.xlane.f32.xlu0 %v358_v29 }
 0x28e   : > { %v360_v30 = vpop.xlane.xlu0 %359 }
 0x28f   : > { %569 = vrcp.f32 %v360_v30  ;;  %v372_v34 = vand.u32 2147483648, %v360_v30  ;;  %v370_v36 = vand.u32 2147483647, %v360_v30  ;;  %vm366_vm2 = vweird.f32 %v360_v30 }
 0x291   : > { %v373_v38 = vor.u32 1.1754944e-38, %v372_v34  ;;  %vm371_vm4 = vcmp.eq.f32.partialorder %v370_v36, 8.507059e+37 }
 0x295   : > { %v570_v31 = vpop.eup %569 }
 0x296   : > { %v362_v32 = vmul.f32 %v570_v31, %v360_v30  ;;  %vm367_vm1 = vweird.f32 %v570_v31 }
 0x297   : > { %vm368_vm3 = vmor %vm366_vm2, %vm367_vm1 }
 0x298   : > { %v363_v33 = vsub.f32 1.0, %v362_v32 }
 0x29a   : > { %v364_v35 = vmul.f32 %v570_v31, %v363_v33 }
 0x29c   : > { %v365_v37 = vadd.f32 %v570_v31, %v364_v35 }
 0x29e   : > { %v369_v39 = vsel %vm368_vm3, %v570_v31, %v365_v37 }
 0x29f   : > { %v374_v40 = vsel %vm371_vm4, %v373_v38, %v369_v39 }
 0x2a0   : > { %v375_v41 = vmul.f32 %v568_v28, %v374_v40 }
 0x2a2   : > { %376 = vst.msk [vmem:[#allocation6] sm:$0x1] %vm351_vm0, %v375_v41 }
 0x2a3 PF: > { %p510_p8 = scmp.eq.s32.totalorder %s717_s19, 3  ;;  %s672_s9 = smov [#allocation6]  }
 0x2a4   : > { %s383_s10 = sshll.u32 %s672_s9, 4  ;;  %s385_s13 = sshll.u32 %s910_s4, 4  ;;  %s384_s10 = int_to_ptr.vmem [resolvable:$true] %s383_s10  ;;  %s386_s13 = int_to_ptr.hbm [resolvable:$true] %s385_s13 }
 0x2a5   : > { %502 = dma.vmem_to_hbm [thread:$0]  (%p510_p8), %s384_s10, 16, %s386_s13, [#allocation5]  }
 0x2a6   : > { %650 = dma.done.wait (%p510_p8), [#allocation5], 16  }
 0x2a7   : > { %652 = vsyncadd (%p510_p8), [#allocation5], 4294967280 }
 0x2a8 PF: > { %p15_p9 = scmp.ge.s32.totalorder %s720_s20, 6   ;;  %s914_s15 = smov %s659_s16 }
 0x2a9   : > { %s915_s16 = smov %s663_s17  ;;  %s916_s17 = smov %s730_s23 }
 0x2aa   : > { %s917_s18 = smov %s720_s20  ;;  %17 = sbr.rel (!%p15_p9) target bundleno = 4 (0x4), region = 81 }
 0x2af   :  { %399 = vsyncpa [#allocation4], 1 }
 0x2b0   :  { %401 = vsyncpa [#allocation4 + $0x1], 1 }
 0x2b1   :  { %402 = vsyncpa [#allocation5], 1 }
 0x2b2   :  { %404 = vsyncpa [#allocation5 + $0x1], 1 }

</bundles_post_ra>
